<compile_context>
chip_gen: v5e
topology: v5e:2x2
jax: 0.10.0
libtpu: 0.0.40
codegen_flags: <defaults>
</compile_context>

<pallas_src>
import functools
import math

import jax
import jax.numpy as jnp
from jax import lax
from jax.experimental import pallas as pl
from jax.experimental.pallas import tpu as pltpu


def _mhsa_kernel(q_ref, k_ref, v_ref,
                 wq_ref, bq_ref, wk_ref, bk_ref, wv_ref, bv_ref,
                 wo_ref, bo_ref,
                 attn_ref, o_ref,
                 ctx_ref,
                 *, num_heads: int, head_dim: int):
    """One grid step = (one batch element, one query tile).

    q_ref            : (TQ,  emb)        bf16 VMEM
    k_ref, v_ref     : (seq, emb)        bf16 VMEM
    wq/wk/wv         : (emb, emb)        bf16 VMEM, block-diagonal, (in,out)
    wo               : (emb, emb)        bf16 VMEM, (in,out)
    bq/bk/bv/bo      : (1, emb)          f32  VMEM
    attn_ref         : (heads, TQ, seq)  f32  output
    o_ref            : (TQ, emb)         f32  output
    ctx_ref          : (TQ, emb)         f32  VMEM scratch (per-head contexts)
    """
    f32 = jnp.float32
    bf16 = jnp.bfloat16

    # Fused (all-heads) projections: one wide MXU matmul each, f32 accumulate.
    qp = jnp.dot(q_ref[...], wq_ref[...], preferred_element_type=f32) + bq_ref[...]
    kp = jnp.dot(k_ref[...], wk_ref[...], preferred_element_type=f32) + bk_ref[...]
    vp = jnp.dot(v_ref[...], wv_ref[...], preferred_element_type=f32) + bv_ref[...]

    qp_b = qp.astype(bf16)
    kp_b = kp.astype(bf16)
    vp_b = vp.astype(bf16)

    scale = 1.0 / math.sqrt(head_dim)

    for h in range(num_heads):            # static unroll; num_heads is small
        lo = h * head_dim
        hi = lo + head_dim
        qh = qp_b[:, lo:hi]               # (TQ,  hd)
        kh = kp_b[:, lo:hi]               # (seq, hd)
        vh = vp_b[:, lo:hi]               # (seq, hd)

        # q @ k^T without an explicit in-kernel transpose of k:
        # contract the last dim of both operands.
        scores = lax.dot_general(
            qh, kh, (((1,), (1,)), ((), ())),
            preferred_element_type=f32) * scale            # (TQ, seq) f32

        # Softmax entirely in f32 on the VPU; reciprocal on the EUP slot.
        m = jnp.max(scores, axis=-1, keepdims=True)
        e = jnp.exp(scores - m)
        denom = jnp.sum(e, axis=-1, keepdims=True)
        attn = e * pl.reciprocal(denom, approx=True)       # (TQ, seq) f32

        attn_ref[h, :, :] = attn
        ctx_ref[:, lo:hi] = jnp.dot(attn.astype(bf16), vh,
                                    preferred_element_type=f32)

    # Output projection on the assembled (TQ, emb) context slab.
    o = (jnp.dot(ctx_ref[...].astype(bf16), wo_ref[...],
                 preferred_element_type=f32) + bo_ref[...])
    o_ref[...] = o.astype(o_ref.dtype)


def multi_head_self_attention(q, k, v, params, *, num_heads: int,
                              q_tile: int = 256):
    """q, k, v: (bs, seq, emb) float32.  Returns (attn_weights, out)."""
    bs, seq, emb = q.shape
    assert emb % num_heads == 0
    head_dim = emb // num_heads

    wq, bq, wk, bk, wv, bv, wo, bo = params

    f32 = jnp.float32
    bf16 = jnp.bfloat16

    # Per-head (hd, hd) weights are shared across heads -> build block-diagonal
    # (emb, emb) weights, already transposed to (in, out) layout so the kernel
    # does x @ W with no in-kernel transpose.  Bit-compatible with per-head.
    eye = jnp.eye(num_heads, dtype=f32)
    wq_bd = jnp.kron(eye, wq.T).astype(bf16)
    wk_bd = jnp.kron(eye, wk.T).astype(bf16)
    wv_bd = jnp.kron(eye, wv.T).astype(bf16)
    wo_t = wo.T.astype(bf16)

    bq_f = jnp.tile(bq, num_heads).reshape(1, emb).astype(f32)
    bk_f = jnp.tile(bk, num_heads).reshape(1, emb).astype(f32)
    bv_f = jnp.tile(bv, num_heads).reshape(1, emb).astype(f32)
    bo_f = bo.reshape(1, emb).astype(f32)

    # Activations in bf16 at the kernel boundary (halves HBM/VMEM traffic).
    q_b = q.astype(bf16)
    k_b = k.astype(bf16)
    v_b = v.astype(bf16)

    # Query tiling bounds per-step VMEM independently of seq.  For the demo
    # shapes this collapses to a single tile per batch element.
    tq = min(q_tile, seq)
    while seq % tq != 0:
        tq //= 2
    n_q_tiles = seq // tq

    kernel = functools.partial(_mhsa_kernel, num_heads=num_heads,
                               head_dim=head_dim)

    def rep(shape):  # weight tensors: replicated across all grid steps
        return pl.BlockSpec(shape, lambda b, t, _s=shape: tuple(0 for _ in _s))

    # Advisory cost estimate for the XLA scheduler.
    proj_flops = 2 * emb * emb * (bs * seq + 2 * bs * n_q_tiles * seq)
    attn_flops = 4 * bs * num_heads * seq * seq * head_dim
    out_flops = 2 * bs * seq * emb * emb
    bytes_in = 3 * bs * seq * emb * 2 + 4 * emb * emb * 2 + 4 * emb * 4
    bytes_out = bs * num_heads * seq * seq * 4 + bs * seq * emb * 4
    cost = pl.CostEstimate(
        flops=int(proj_flops + attn_flops + out_flops),
        transcendentals=int(bs * num_heads * seq * seq),
        bytes_accessed=int(bytes_in + bytes_out))

    attn_w, out = pl.pallas_call(
        kernel,
        grid=(bs, n_q_tiles),
        in_specs=[
            pl.BlockSpec((None, tq, emb), lambda b, t: (b, t, 0)),   # q tile
            pl.BlockSpec((None, seq, emb), lambda b, t: (b, 0, 0)),  # k
            pl.BlockSpec((None, seq, emb), lambda b, t: (b, 0, 0)),  # v
            rep((emb, emb)), rep((1, emb)),                          # wq, bq
            rep((emb, emb)), rep((1, emb)),                          # wk, bk
            rep((emb, emb)), rep((1, emb)),                          # wv, bv
            rep((emb, emb)), rep((1, emb)),                          # wo, bo
        ],
        out_specs=[
            pl.BlockSpec((None, num_heads, tq, seq),
                         lambda b, t: (b, 0, t, 0)),
            pl.BlockSpec((None, tq, emb), lambda b, t: (b, t, 0)),
        ],
        out_shape=[
            jax.ShapeDtypeStruct((bs, num_heads, seq, seq), jnp.float32),
            jax.ShapeDtypeStruct((bs, seq, emb), jnp.float32),
        ],
        scratch_shapes=[pltpu.VMEM((tq, emb), jnp.float32)],
        compiler_params=pltpu.CompilerParams(
            dimension_semantics=("parallel", "parallel")),
        cost_estimate=cost,
    )(q_b, k_b, v_b, wq_bd, bq_f, wk_bd, bk_f, wv_bd, bv_f, wo_t, bo_f)
    return attn_w, out


def _reference(q, k, v, params, *, num_heads: int):
    """Pure-JAX f32 reference replicating the PyTorch forward."""
    bs, seq, emb = q.shape
    hd = emb // num_heads
    wq, bq, wk, bk, wv, bv, wo, bo = params

    def split(x):  # (bs, seq, emb) -> (bs, heads, seq, hd)
        return x.reshape(bs, seq, num_heads, hd).transpose(0, 2, 1, 3)

    qh = split(q) @ wq.T + bq
    kh = split(k) @ wk.T + bk
    vh = split(v) @ wv.T + bv
    scores = qh @ jnp.swapaxes(kh, -1, -2) / math.sqrt(hd)
    attn = jax.nn.softmax(scores, axis=-1)
    o = attn @ vh                                    # (bs, heads, seq, hd)
    o = o.transpose(0, 2, 1, 3).reshape(bs, seq, emb)
    o = o @ wo.T + bo
    return attn, o


def _init_params(key, emb, num_heads):
    hd = emb // num_heads
    keys = jax.random.split(key, 8)

    def lin(kw, kb, fan_in, fan_out):
        bound = 1.0 / math.sqrt(fan_in)
        w = jax.random.uniform(kw, (fan_out, fan_in), jnp.float32, -bound, bound)
        b = jax.random.uniform(kb, (fan_out,), jnp.float32, -bound, bound)
        return w, b

    wq, bq = lin(keys[0], keys[1], hd, hd)
    wk, bk = lin(keys[2], keys[3], hd, hd)
    wv, bv = lin(keys[4], keys[5], hd, hd)
    wo, bo = lin(keys[6], keys[7], emb, emb)
    return (wq, bq, wk, bk, wv, bv, wo, bo)


if __name__ == "__main__":
    key = jax.random.PRNGKey(0)
    bs, seq, emb, num_heads = 2, 16, 32, 4

    k_p, k_q, k_k, k_v = jax.random.split(key, 4)
    params = _init_params(k_p, emb, num_heads)
    q = jax.random.normal(k_q, (bs, seq, emb), jnp.float32)
    k = jax.random.normal(k_k, (bs, seq, emb), jnp.float32)
    v = jax.random.normal(k_v, (bs, seq, emb), jnp.float32)

    attn_w, out = multi_head_self_attention(q, k, v, params,
                                            num_heads=num_heads)
    jax.block_until_ready((attn_w, out))

    attn_ref, out_ref = _reference(q, k, v, params, num_heads=num_heads)
    # Tolerances loosened vs. pure-f32: bf16 MXU operands + approx reciprocal.
    assert jnp.allclose(attn_w, attn_ref, atol=2e-2, rtol=2e-2), (
        float(jnp.max(jnp.abs(attn_w - attn_ref))))
    assert jnp.allclose(out, out_ref, atol=5e-2, rtol=5e-2), (
        float(jnp.max(jnp.abs(out - out_ref))))

    print("KERNEL_OK")
</pallas_src>

<mosaic_0001>
module attributes {stable_mosaic.version = 11 : i64} {
  func.func @_mhsa_kernel(%arg0: i32, %arg1: i32, %arg2: memref<1x16x32xbf16, #tpu.memory_space<vmem>>, %arg3: memref<1x16x32xbf16, #tpu.memory_space<vmem>>, %arg4: memref<1x16x32xbf16, #tpu.memory_space<vmem>>, %arg5: memref<32x32xbf16, #tpu.memory_space<vmem>>, %arg6: memref<1x32xf32, #tpu.memory_space<vmem>>, %arg7: memref<32x32xbf16, #tpu.memory_space<vmem>>, %arg8: memref<1x32xf32, #tpu.memory_space<vmem>>, %arg9: memref<32x32xbf16, #tpu.memory_space<vmem>>, %arg10: memref<1x32xf32, #tpu.memory_space<vmem>>, %arg11: memref<32x32xbf16, #tpu.memory_space<vmem>>, %arg12: memref<1x32xf32, #tpu.memory_space<vmem>>, %arg13: memref<1x4x16x16xf32, #tpu.memory_space<vmem>>, %arg14: memref<1x16x32xf32, #tpu.memory_space<vmem>>, %arg15: memref<16x32xf32, #tpu.memory_space<vmem>>) attributes {dimension_semantics = [#tpu.dimension_semantics<parallel>, #tpu.dimension_semantics<parallel>], iteration_bounds = array<i64: 2, 1>, scalar_prefetch = 0 : i64, scratch_operands = 1 : i64, tpu.core_type = #tpu.core_type<tc>, window_params = [{transform_indices = @transform_0, window_bounds = array<i64: 1, 16, 32>}, {transform_indices = @transform_1, window_bounds = array<i64: 1, 16, 32>}, {transform_indices = @transform_2, window_bounds = array<i64: 1, 16, 32>}, {pipeline_mode = #tpu.pipeline_mode<synchronous>, transform_indices = @transform_3, window_bounds = array<i64: 32, 32>}, {pipeline_mode = #tpu.pipeline_mode<synchronous>, transform_indices = @transform_4, window_bounds = array<i64: 1, 32>}, {pipeline_mode = #tpu.pipeline_mode<synchronous>, transform_indices = @transform_5, window_bounds = array<i64: 32, 32>}, {pipeline_mode = #tpu.pipeline_mode<synchronous>, transform_indices = @transform_6, window_bounds = array<i64: 1, 32>}, {pipeline_mode = #tpu.pipeline_mode<synchronous>, transform_indices = @transform_7, window_bounds = array<i64: 32, 32>}, {pipeline_mode = #tpu.pipeline_mode<synchronous>, transform_indices = @transform_8, window_bounds = array<i64: 1, 32>}, {pipeline_mode = #tpu.pipeline_mode<synchronous>, transform_indices = @transform_9, window_bounds = array<i64: 32, 32>}, {pipeline_mode = #tpu.pipeline_mode<synchronous>, transform_indices = @transform_10, window_bounds = array<i64: 1, 32>}, {transform_indices = @transform_11, window_bounds = array<i64: 1, 4, 16, 16>}, {transform_indices = @transform_12, window_bounds = array<i64: 1, 16, 32>}]} {
    %c0 = arith.constant 0 : index
    %c0_0 = arith.constant 0 : index
    %c0_1 = arith.constant 0 : index
    %0 = vector.load %arg2[%c0, %c0_0, %c0_1] : memref<1x16x32xbf16, #tpu.memory_space<vmem>>, vector<1x16x32xbf16>
    %1 = vector.shape_cast %0 : vector<1x16x32xbf16> to vector<16x32xbf16>
    %c0_2 = arith.constant 0 : index
    %c0_3 = arith.constant 0 : index
    %2 = vector.load %arg5[%c0_2, %c0_3] : memref<32x32xbf16, #tpu.memory_space<vmem>>, vector<32x32xbf16>
    %cst = arith.constant dense<0.000000e+00> : vector<16x32xf32>
    %3 = tpu.matmul %1, %2, %cst {dimension_numbers = #tpu.dot_dimension_numbers<[1], [0], [0], [1], [0, 0, 1, 1], [], []>} : vector<16x32xbf16>, vector<32x32xbf16>, vector<16x32xf32> -> vector<16x32xf32>
    %c0_4 = arith.constant 0 : index
    %c0_5 = arith.constant 0 : index
    %4 = vector.load %arg6[%c0_4, %c0_5] : memref<1x32xf32, #tpu.memory_space<vmem>>, vector<1x32xf32>
    %5 = vector.broadcast %4 : vector<1x32xf32> to vector<16x32xf32>
    %6 = arith.addf %3, %5 : vector<16x32xf32>
    %c0_6 = arith.constant 0 : index
    %c0_7 = arith.constant 0 : index
    %c0_8 = arith.constant 0 : index
    %7 = vector.load %arg3[%c0_6, %c0_7, %c0_8] : memref<1x16x32xbf16, #tpu.memory_space<vmem>>, vector<1x16x32xbf16>
    %8 = vector.shape_cast %7 : vector<1x16x32xbf16> to vector<16x32xbf16>
    %c0_9 = arith.constant 0 : index
    %c0_10 = arith.constant 0 : index
    %9 = vector.load %arg7[%c0_9, %c0_10] : memref<32x32xbf16, #tpu.memory_space<vmem>>, vector<32x32xbf16>
    %cst_11 = arith.constant dense<0.000000e+00> : vector<16x32xf32>
    %10 = tpu.matmul %8, %9, %cst_11 {dimension_numbers = #tpu.dot_dimension_numbers<[1], [0], [0], [1], [0, 0, 1, 1], [], []>} : vector<16x32xbf16>, vector<32x32xbf16>, vector<16x32xf32> -> vector<16x32xf32>
    %c0_12 = arith.constant 0 : index
    %c0_13 = arith.constant 0 : index
    %11 = vector.load %arg8[%c0_12, %c0_13] : memref<1x32xf32, #tpu.memory_space<vmem>>, vector<1x32xf32>
    %12 = vector.broadcast %11 : vector<1x32xf32> to vector<16x32xf32>
    %13 = arith.addf %10, %12 : vector<16x32xf32>
    %c0_14 = arith.constant 0 : index
    %c0_15 = arith.constant 0 : index
    %c0_16 = arith.constant 0 : index
    %14 = vector.load %arg4[%c0_14, %c0_15, %c0_16] : memref<1x16x32xbf16, #tpu.memory_space<vmem>>, vector<1x16x32xbf16>
    %15 = vector.shape_cast %14 : vector<1x16x32xbf16> to vector<16x32xbf16>
    %c0_17 = arith.constant 0 : index
    %c0_18 = arith.constant 0 : index
    %16 = vector.load %arg9[%c0_17, %c0_18] : memref<32x32xbf16, #tpu.memory_space<vmem>>, vector<32x32xbf16>
    %cst_19 = arith.constant dense<0.000000e+00> : vector<16x32xf32>
    %17 = tpu.matmul %15, %16, %cst_19 {dimension_numbers = #tpu.dot_dimension_numbers<[1], [0], [0], [1], [0, 0, 1, 1], [], []>} : vector<16x32xbf16>, vector<32x32xbf16>, vector<16x32xf32> -> vector<16x32xf32>
    %c0_20 = arith.constant 0 : index
    %c0_21 = arith.constant 0 : index
    %18 = vector.load %arg10[%c0_20, %c0_21] : memref<1x32xf32, #tpu.memory_space<vmem>>, vector<1x32xf32>
    %19 = vector.broadcast %18 : vector<1x32xf32> to vector<16x32xf32>
    %20 = arith.addf %17, %19 : vector<16x32xf32>
    %21 = arith.truncf %6 : vector<16x32xf32> to vector<16x32xbf16>
    %22 = arith.truncf %13 : vector<16x32xf32> to vector<16x32xbf16>
    %23 = arith.truncf %20 : vector<16x32xf32> to vector<16x32xbf16>
    %24 = vector.extract_strided_slice %21 {offsets = [0, 0], sizes = [16, 8], strides = [1, 1]} : vector<16x32xbf16> to vector<16x8xbf16>
    %25 = vector.extract_strided_slice %22 {offsets = [0, 0], sizes = [16, 8], strides = [1, 1]} : vector<16x32xbf16> to vector<16x8xbf16>
    %26 = vector.extract_strided_slice %23 {offsets = [0, 0], sizes = [16, 8], strides = [1, 1]} : vector<16x32xbf16> to vector<16x8xbf16>
    %cst_22 = arith.constant dense<0.000000e+00> : vector<16x16xf32>
    %27 = tpu.matmul %24, %25, %cst_22 {dimension_numbers = #tpu.dot_dimension_numbers<[1], [1], [0], [0], [0, 0, 1, 0], [], []>} : vector<16x8xbf16>, vector<16x8xbf16>, vector<16x16xf32> -> vector<16x16xf32>
    %cst_23 = arith.constant 0.353553385 : f32
    %28 = vector.broadcast %cst_23 : f32 to vector<16x16xf32>
    %29 = arith.mulf %27, %28 : vector<16x16xf32>
    %cst_24 = arith.constant dense<0xFF800000> : vector<16xf32>
    %30 = vector.multi_reduction <maximumf>, %29, %cst_24 [1] : vector<16x16xf32> to vector<16xf32>
    %31 = vector.shape_cast %30 : vector<16xf32> to vector<16x1xf32>
    %32 = vector.broadcast %31 : vector<16x1xf32> to vector<16x16xf32>
    %33 = arith.subf %29, %32 : vector<16x16xf32>
    %34 = math.exp %33 : vector<16x16xf32>
    %cst_25 = arith.constant dense<0.000000e+00> : vector<16xf32>
    %35 = vector.multi_reduction <add>, %34, %cst_25 [1] : vector<16x16xf32> to vector<16xf32>
    %36 = vector.shape_cast %35 : vector<16xf32> to vector<16x1xf32>
    %37 = tpu.reciprocal %36 {approx = true} : vector<16x1xf32> -> vector<16x1xf32>
    %38 = vector.broadcast %37 : vector<16x1xf32> to vector<16x16xf32>
    %39 = arith.mulf %34, %38 : vector<16x16xf32>
    %c0_26 = arith.constant 0 : index
    %c0_27 = arith.constant 0 : index
    %c0_28 = arith.constant 0 : index
    %c0_29 = arith.constant 0 : index
    %40 = vector.load %arg13[%c0_26, %c0_27, %c0_28, %c0_29] : memref<1x4x16x16xf32, #tpu.memory_space<vmem>>, vector<1x1x16x16xf32>
    %41 = vector.shape_cast %40 : vector<1x1x16x16xf32> to vector<16x16xf32>
    %42 = vector.shape_cast %39 : vector<16x16xf32> to vector<1x1x16x16xf32>
    tpu.vector_store %arg13[%c0_26, %c0_27, %c0_28, %c0_29], %42 {strides = array<i32>} : memref<1x4x16x16xf32, #tpu.memory_space<vmem>>, vector<1x1x16x16xf32>,
    %43 = arith.truncf %39 : vector<16x16xf32> to vector<16x16xbf16>
    %cst_30 = arith.constant dense<0.000000e+00> : vector<16x8xf32>
    %44 = tpu.matmul %43, %26, %cst_30 {dimension_numbers = #tpu.dot_dimension_numbers<[1], [0], [0], [1], [0, 0, 1, 1], [], []>} : vector<16x16xbf16>, vector<16x8xbf16>, vector<16x8xf32> -> vector<16x8xf32>
    %c0_31 = arith.constant 0 : index
    %c0_32 = arith.constant 0 : index
    %45 = vector.load %arg15[%c0_31, %c0_32] : memref<16x32xf32, #tpu.memory_space<vmem>>, vector<16x8xf32>
    tpu.vector_store %arg15[%c0_31, %c0_32], %44 {strides = array<i32>} : memref<16x32xf32, #tpu.memory_space<vmem>>, vector<16x8xf32>,
    %46 = vector.extract_strided_slice %21 {offsets = [0, 8], sizes = [16, 8], strides = [1, 1]} : vector<16x32xbf16> to vector<16x8xbf16>
    %47 = vector.extract_strided_slice %22 {offsets = [0, 8], sizes = [16, 8], strides = [1, 1]} : vector<16x32xbf16> to vector<16x8xbf16>
    %48 = vector.extract_strided_slice %23 {offsets = [0, 8], sizes = [16, 8], strides = [1, 1]} : vector<16x32xbf16> to vector<16x8xbf16>
    %cst_33 = arith.constant dense<0.000000e+00> : vector<16x16xf32>
    %49 = tpu.matmul %46, %47, %cst_33 {dimension_numbers = #tpu.dot_dimension_numbers<[1], [1], [0], [0], [0, 0, 1, 0], [], []>} : vector<16x8xbf16>, vector<16x8xbf16>, vector<16x16xf32> -> vector<16x16xf32>
    %cst_34 = arith.constant 0.353553385 : f32
    %50 = vector.broadcast %cst_34 : f32 to vector<16x16xf32>
    %51 = arith.mulf %49, %50 : vector<16x16xf32>
    %cst_35 = arith.constant dense<0xFF800000> : vector<16xf32>
    %52 = vector.multi_reduction <maximumf>, %51, %cst_35 [1] : vector<16x16xf32> to vector<16xf32>
    %53 = vector.shape_cast %52 : vector<16xf32> to vector<16x1xf32>
    %54 = vector.broadcast %53 : vector<16x1xf32> to vector<16x16xf32>
    %55 = arith.subf %51, %54 : vector<16x16xf32>
    %56 = math.exp %55 : vector<16x16xf32>
    %cst_36 = arith.constant dense<0.000000e+00> : vector<16xf32>
    %57 = vector.multi_reduction <add>, %56, %cst_36 [1] : vector<16x16xf32> to vector<16xf32>
    %58 = vector.shape_cast %57 : vector<16xf32> to vector<16x1xf32>
    %59 = tpu.reciprocal %58 {approx = true} : vector<16x1xf32> -> vector<16x1xf32>
    %60 = vector.broadcast %59 : vector<16x1xf32> to vector<16x16xf32>
    %61 = arith.mulf %56, %60 : vector<16x16xf32>
    %c0_37 = arith.constant 0 : index
    %c1 = arith.constant 1 : index
    %c0_38 = arith.constant 0 : index
    %c0_39 = arith.constant 0 : index
    %62 = vector.load %arg13[%c0_37, %c1, %c0_38, %c0_39] : memref<1x4x16x16xf32, #tpu.memory_space<vmem>>, vector<1x1x16x16xf32>
    %63 = vector.shape_cast %62 : vector<1x1x16x16xf32> to vector<16x16xf32>
    %64 = vector.shape_cast %61 : vector<16x16xf32> to vector<1x1x16x16xf32>
    tpu.vector_store %arg13[%c0_37, %c1, %c0_38, %c0_39], %64 {strides = array<i32>} : memref<1x4x16x16xf32, #tpu.memory_space<vmem>>, vector<1x1x16x16xf32>,
    %65 = arith.truncf %61 : vector<16x16xf32> to vector<16x16xbf16>
    %cst_40 = arith.constant dense<0.000000e+00> : vector<16x8xf32>
    %66 = tpu.matmul %65, %48, %cst_40 {dimension_numbers = #tpu.dot_dimension_numbers<[1], [0], [0], [1], [0, 0, 1, 1], [], []>} : vector<16x16xbf16>, vector<16x8xbf16>, vector<16x8xf32> -> vector<16x8xf32>
    %c0_41 = arith.constant 0 : index
    %c8 = arith.constant 8 : index
    %67 = vector.load %arg15[%c0_41, %c8] : memref<16x32xf32, #tpu.memory_space<vmem>>, vector<16x8xf32>
    tpu.vector_store %arg15[%c0_41, %c8], %66 {strides = array<i32>} : memref<16x32xf32, #tpu.memory_space<vmem>>, vector<16x8xf32>,
    %68 = vector.extract_strided_slice %21 {offsets = [0, 16], sizes = [16, 8], strides = [1, 1]} : vector<16x32xbf16> to vector<16x8xbf16>
    %69 = vector.extract_strided_slice %22 {offsets = [0, 16], sizes = [16, 8], strides = [1, 1]} : vector<16x32xbf16> to vector<16x8xbf16>
    %70 = vector.extract_strided_slice %23 {offsets = [0, 16], sizes = [16, 8], strides = [1, 1]} : vector<16x32xbf16> to vector<16x8xbf16>
    %cst_42 = arith.constant dense<0.000000e+00> : vector<16x16xf32>
    %71 = tpu.matmul %68, %69, %cst_42 {dimension_numbers = #tpu.dot_dimension_numbers<[1], [1], [0], [0], [0, 0, 1, 0], [], []>} : vector<16x8xbf16>, vector<16x8xbf16>, vector<16x16xf32> -> vector<16x16xf32>
    %cst_43 = arith.constant 0.353553385 : f32
    %72 = vector.broadcast %cst_43 : f32 to vector<16x16xf32>
    %73 = arith.mulf %71, %72 : vector<16x16xf32>
    %cst_44 = arith.constant dense<0xFF800000> : vector<16xf32>
    %74 = vector.multi_reduction <maximumf>, %73, %cst_44 [1] : vector<16x16xf32> to vector<16xf32>
    %75 = vector.shape_cast %74 : vector<16xf32> to vector<16x1xf32>
    %76 = vector.broadcast %75 : vector<16x1xf32> to vector<16x16xf32>
    %77 = arith.subf %73, %76 : vector<16x16xf32>
    %78 = math.exp %77 : vector<16x16xf32>
    %cst_45 = arith.constant dense<0.000000e+00> : vector<16xf32>
    %79 = vector.multi_reduction <add>, %78, %cst_45 [1] : vector<16x16xf32> to vector<16xf32>
    %80 = vector.shape_cast %79 : vector<16xf32> to vector<16x1xf32>
    %81 = tpu.reciprocal %80 {approx = true} : vector<16x1xf32> -> vector<16x1xf32>
    %82 = vector.broadcast %81 : vector<16x1xf32> to vector<16x16xf32>
    %83 = arith.mulf %78, %82 : vector<16x16xf32>
    %c0_46 = arith.constant 0 : index
    %c2 = arith.constant 2 : index
    %c0_47 = arith.constant 0 : index
    %c0_48 = arith.constant 0 : index
    %84 = vector.load %arg13[%c0_46, %c2, %c0_47, %c0_48] : memref<1x4x16x16xf32, #tpu.memory_space<vmem>>, vector<1x1x16x16xf32>
    %85 = vector.shape_cast %84 : vector<1x1x16x16xf32> to vector<16x16xf32>
    %86 = vector.shape_cast %83 : vector<16x16xf32> to vector<1x1x16x16xf32>
    tpu.vector_store %arg13[%c0_46, %c2, %c0_47, %c0_48], %86 {strides = array<i32>} : memref<1x4x16x16xf32, #tpu.memory_space<vmem>>, vector<1x1x16x16xf32>,
    %87 = arith.truncf %83 : vector<16x16xf32> to vector<16x16xbf16>
    %cst_49 = arith.constant dense<0.000000e+00> : vector<16x8xf32>
    %88 = tpu.matmul %87, %70, %cst_49 {dimension_numbers = #tpu.dot_dimension_numbers<[1], [0], [0], [1], [0, 0, 1, 1], [], []>} : vector<16x16xbf16>, vector<16x8xbf16>, vector<16x8xf32> -> vector<16x8xf32>
    %c0_50 = arith.constant 0 : index
    %c16 = arith.constant 16 : index
    %89 = vector.load %arg15[%c0_50, %c16] : memref<16x32xf32, #tpu.memory_space<vmem>>, vector<16x8xf32>
    tpu.vector_store %arg15[%c0_50, %c16], %88 {strides = array<i32>} : memref<16x32xf32, #tpu.memory_space<vmem>>, vector<16x8xf32>,
    %90 = vector.extract_strided_slice %21 {offsets = [0, 24], sizes = [16, 8], strides = [1, 1]} : vector<16x32xbf16> to vector<16x8xbf16>
    %91 = vector.extract_strided_slice %22 {offsets = [0, 24], sizes = [16, 8], strides = [1, 1]} : vector<16x32xbf16> to vector<16x8xbf16>
    %92 = vector.extract_strided_slice %23 {offsets = [0, 24], sizes = [16, 8], strides = [1, 1]} : vector<16x32xbf16> to vector<16x8xbf16>
    %cst_51 = arith.constant dense<0.000000e+00> : vector<16x16xf32>
    %93 = tpu.matmul %90, %91, %cst_51 {dimension_numbers = #tpu.dot_dimension_numbers<[1], [1], [0], [0], [0, 0, 1, 0], [], []>} : vector<16x8xbf16>, vector<16x8xbf16>, vector<16x16xf32> -> vector<16x16xf32>
    %cst_52 = arith.constant 0.353553385 : f32
    %94 = vector.broadcast %cst_52 : f32 to vector<16x16xf32>
    %95 = arith.mulf %93, %94 : vector<16x16xf32>
    %cst_53 = arith.constant dense<0xFF800000> : vector<16xf32>
    %96 = vector.multi_reduction <maximumf>, %95, %cst_53 [1] : vector<16x16xf32> to vector<16xf32>
    %97 = vector.shape_cast %96 : vector<16xf32> to vector<16x1xf32>
    %98 = vector.broadcast %97 : vector<16x1xf32> to vector<16x16xf32>
    %99 = arith.subf %95, %98 : vector<16x16xf32>
    %100 = math.exp %99 : vector<16x16xf32>
    %cst_54 = arith.constant dense<0.000000e+00> : vector<16xf32>
    %101 = vector.multi_reduction <add>, %100, %cst_54 [1] : vector<16x16xf32> to vector<16xf32>
    %102 = vector.shape_cast %101 : vector<16xf32> to vector<16x1xf32>
    %103 = tpu.reciprocal %102 {approx = true} : vector<16x1xf32> -> vector<16x1xf32>
    %104 = vector.broadcast %103 : vector<16x1xf32> to vector<16x16xf32>
    %105 = arith.mulf %100, %104 : vector<16x16xf32>
    %c0_55 = arith.constant 0 : index
    %c3 = arith.constant 3 : index
    %c0_56 = arith.constant 0 : index
    %c0_57 = arith.constant 0 : index
    %106 = vector.load %arg13[%c0_55, %c3, %c0_56, %c0_57] : memref<1x4x16x16xf32, #tpu.memory_space<vmem>>, vector<1x1x16x16xf32>
    %107 = vector.shape_cast %106 : vector<1x1x16x16xf32> to vector<16x16xf32>
    %108 = vector.shape_cast %105 : vector<16x16xf32> to vector<1x1x16x16xf32>
    tpu.vector_store %arg13[%c0_55, %c3, %c0_56, %c0_57], %108 {strides = array<i32>} : memref<1x4x16x16xf32, #tpu.memory_space<vmem>>, vector<1x1x16x16xf32>,
    %109 = arith.truncf %105 : vector<16x16xf32> to vector<16x16xbf16>
    %cst_58 = arith.constant dense<0.000000e+00> : vector<16x8xf32>
    %110 = tpu.matmul %109, %92, %cst_58 {dimension_numbers = #tpu.dot_dimension_numbers<[1], [0], [0], [1], [0, 0, 1, 1], [], []>} : vector<16x16xbf16>, vector<16x8xbf16>, vector<16x8xf32> -> vector<16x8xf32>
    %c0_59 = arith.constant 0 : index
    %c24 = arith.constant 24 : index
    %111 = vector.load %arg15[%c0_59, %c24] : memref<16x32xf32, #tpu.memory_space<vmem>>, vector<16x8xf32>
    tpu.vector_store %arg15[%c0_59, %c24], %110 {strides = array<i32>} : memref<16x32xf32, #tpu.memory_space<vmem>>, vector<16x8xf32>,
    %c0_60 = arith.constant 0 : index
    %c0_61 = arith.constant 0 : index
    %112 = vector.load %arg15[%c0_60, %c0_61] : memref<16x32xf32, #tpu.memory_space<vmem>>, vector<16x32xf32>
    %113 = arith.truncf %112 : vector<16x32xf32> to vector<16x32xbf16>
    %c0_62 = arith.constant 0 : index
    %c0_63 = arith.constant 0 : index
    %114 = vector.load %arg11[%c0_62, %c0_63] : memref<32x32xbf16, #tpu.memory_space<vmem>>, vector<32x32xbf16>
    %cst_64 = arith.constant dense<0.000000e+00> : vector<16x32xf32>
    %115 = tpu.matmul %113, %114, %cst_64 {dimension_numbers = #tpu.dot_dimension_numbers<[1], [0], [0], [1], [0, 0, 1, 1], [], []>} : vector<16x32xbf16>, vector<32x32xbf16>, vector<16x32xf32> -> vector<16x32xf32>
    %c0_65 = arith.constant 0 : index
    %c0_66 = arith.constant 0 : index
    %116 = vector.load %arg12[%c0_65, %c0_66] : memref<1x32xf32, #tpu.memory_space<vmem>>, vector<1x32xf32>
    %117 = vector.broadcast %116 : vector<1x32xf32> to vector<16x32xf32>
    %118 = arith.addf %115, %117 : vector<16x32xf32>
    %c0_67 = arith.constant 0 : index
    %c0_68 = arith.constant 0 : index
    %c0_69 = arith.constant 0 : index
    %119 = vector.load %arg14[%c0_67, %c0_68, %c0_69] : memref<1x16x32xf32, #tpu.memory_space<vmem>>, vector<1x16x32xf32>
    %120 = vector.shape_cast %119 : vector<1x16x32xf32> to vector<16x32xf32>
    %121 = vector.shape_cast %118 : vector<16x32xf32> to vector<1x16x32xf32>
    tpu.vector_store %arg14[%c0_67, %c0_68, %c0_69], %121 {strides = array<i32>} : memref<1x16x32xf32, #tpu.memory_space<vmem>>, vector<1x16x32xf32>,
    return
  }
  func.func @transform_0(%arg0: i32, %arg1: i32) -> (i32, i32, i32) {
    %c0_i32 = arith.constant 0 : i32
    %c0_i32_0 = arith.constant 0 : i32
    return %arg0, %arg1, %c0_i32 : i32, i32, i32
  }
  func.func @transform_1(%arg0: i32, %arg1: i32) -> (i32, i32, i32) {
    %c0_i32 = arith.constant 0 : i32
    %c0_i32_0 = arith.constant 0 : i32
    %c0_i32_1 = arith.constant 0 : i32
    return %arg0, %c0_i32, %c0_i32_0 : i32, i32, i32
  }
  func.func @transform_2(%arg0: i32, %arg1: i32) -> (i32, i32, i32) {
    %c0_i32 = arith.constant 0 : i32
    %c0_i32_0 = arith.constant 0 : i32
    %c0_i32_1 = arith.constant 0 : i32
    return %arg0, %c0_i32, %c0_i32_0 : i32, i32, i32
  }
  func.func @transform_3(%arg0: i32, %arg1: i32) -> (i32, i32) {
    %c0_i32 = arith.constant 0 : i32
    %c0_i32_0 = arith.constant 0 : i32
    %c0_i32_1 = arith.constant 0 : i32
    return %c0_i32, %c0_i32_0 : i32, i32
  }
  func.func @transform_4(%arg0: i32, %arg1: i32) -> (i32, i32) {
    %c0_i32 = arith.constant 0 : i32
    %c0_i32_0 = arith.constant 0 : i32
    %c0_i32_1 = arith.constant 0 : i32
    return %c0_i32, %c0_i32_0 : i32, i32
  }
  func.func @transform_5(%arg0: i32, %arg1: i32) -> (i32, i32) {
    %c0_i32 = arith.constant 0 : i32
    %c0_i32_0 = arith.constant 0 : i32
    %c0_i32_1 = arith.constant 0 : i32
    return %c0_i32, %c0_i32_0 : i32, i32
  }
  func.func @transform_6(%arg0: i32, %arg1: i32) -> (i32, i32) {
    %c0_i32 = arith.constant 0 : i32
    %c0_i32_0 = arith.constant 0 : i32
    %c0_i32_1 = arith.constant 0 : i32
    return %c0_i32, %c0_i32_0 : i32, i32
  }
  func.func @transform_7(%arg0: i32, %arg1: i32) -> (i32, i32) {
    %c0_i32 = arith.constant 0 : i32
    %c0_i32_0 = arith.constant 0 : i32
    %c0_i32_1 = arith.constant 0 : i32
    return %c0_i32, %c0_i32_0 : i32, i32
  }
  func.func @transform_8(%arg0: i32, %arg1: i32) -> (i32, i32) {
    %c0_i32 = arith.constant 0 : i32
    %c0_i32_0 = arith.constant 0 : i32
    %c0_i32_1 = arith.constant 0 : i32
    return %c0_i32, %c0_i32_0 : i32, i32
  }
  func.func @transform_9(%arg0: i32, %arg1: i32) -> (i32, i32) {
    %c0_i32 = arith.constant 0 : i32
    %c0_i32_0 = arith.constant 0 : i32
    %c0_i32_1 = arith.constant 0 : i32
    return %c0_i32, %c0_i32_0 : i32, i32
  }
  func.func @transform_10(%arg0: i32, %arg1: i32) -> (i32, i32) {
    %c0_i32 = arith.constant 0 : i32
    %c0_i32_0 = arith.constant 0 : i32
    %c0_i32_1 = arith.constant 0 : i32
    return %c0_i32, %c0_i32_0 : i32, i32
  }
  func.func @transform_11(%arg0: i32, %arg1: i32) -> (i32, i32, i32, i32) {
    %c0_i32 = arith.constant 0 : i32
    %c0_i32_0 = arith.constant 0 : i32
    %c0_i32_1 = arith.constant 0 : i32
    return %arg0, %c0_i32, %arg1, %c0_i32_0 : i32, i32, i32, i32
  }
  func.func @transform_12(%arg0: i32, %arg1: i32) -> (i32, i32, i32) {
    %c0_i32 = arith.constant 0 : i32
    %c0_i32_0 = arith.constant 0 : i32
    return %arg0, %arg1, %c0_i32 : i32, i32, i32
  }
}

</mosaic_0001>

<bundles_post_ra>
// kernel: tpu_custom_call.1
= control target key start
LH: loop header
LB: loop body
LE: loop exit
PB: predicated region body
PF: predicated region fallthrough
CT: control target
= control target key end

     0   :  { %s2409_s0 = inlined_call_operand.hbm [shape: bf16[2,16,32], index: 0, kind: input, shape index: {}]   ;;  %s2410_s1 = inlined_call_operand.hbm [shape: bf16[2,16,32], index: 1, kind: input, shape index: {}]   ;;  %s2411_s2 = inlined_call_operand.hbm [shape: bf16[2,16,32], index: 2, kind: input, shape index: {}]   ;;  %s2412_s3 = inlined_call_operand.hbm [shape: bf16[32,32], index: 3, kind: input, shape index: {}]   ;;  %s2413_s4 = inlined_call_operand.vmem [shape: f32[1,32], index: 4, kind: input, shape index: {}]   ;;  %s2414_s5 = inlined_call_operand.hbm [shape: bf16[32,32], index: 5, kind: input, shape index: {}]   ;;  %s2415_s6 = inlined_call_operand.vmem [shape: f32[1,32], index: 6, kind: input, shape index: {}]   ;;  %s2416_s7 = inlined_call_operand.hbm [shape: bf16[32,32], index: 7, kind: input, shape index: {}]   ;;  %s2417_s8 = inlined_call_operand.vmem [shape: f32[1,32], index: 8, kind: input, shape index: {}]   ;;  %s2418_s9 = inlined_call_operand.hbm [shape: bf16[32,32], index: 9, kind: input, shape index: {}]   ;;  %s2419_s10 = inlined_call_operand.vmem [shape: f32[1,32], index: 10, kind: input, shape index: {}]   ;;  %s2420_s11 = inlined_call_operand.hbm [shape: f32[2,4,16,16], index: 11, kind: output, shape index: {0}]   ;;  %s2421_s12 = inlined_call_operand.hbm [shape: f32[2,16,32], index: 12, kind: output, shape index: {1}]  }
   0x1   :  { %2437 = sst [smem:[#allocation31_spill]] %s2409_s0 }
   0x2   :  { %2438 = sst [smem:[#allocation32_spill]] %s2410_s1 }
   0x3   :  { %2439 = sst [smem:[#allocation33_spill]] %s2412_s3 }
   0x4   :  { %2440 = sst [smem:[#allocation34_spill]] %s2414_s5 }
   0x5   :  { %2441 = sst [smem:[#allocation35_spill]] %s2416_s7 }
   0x6   :  { %2442 = sst [smem:[#allocation36_spill]] %s2419_s10 }
   0x7   :  { %2443 = sst [smem:[#allocation37_spill]] %s2420_s11 }
   0x8   :  { %2444 = sst [smem:[#allocation38_spill]] %s2421_s12 }
   0x9   :  { %18 = vsyncpa [#allocation4], 0 }
   0xa   :  { %20 = vsyncpa [#allocation4 + $0x1], 0 }
   0xb   :  { %21 = vsyncpa [#allocation7], 0 }
   0xc   :  { %23 = vsyncpa [#allocation7 + $0x1], 0 }
   0xd   :  { %24 = vsyncpa [#allocation10], 0 }
   0xe   :  { %25 = vsyncpa [#allocation13], 0 }
   0xf   :  { %26 = vsyncpa [#allocation5], 0 }
  0x10   :  { %28 = vsyncpa [#allocation5 + $0x1], 0 }
  0x11   :  { %29 = vsyncpa [#allocation17], 0 }
  0x12   :  { %31 = vsyncpa [#allocation17 + $0x1], 0  ;;  %s2068_s21 = smov 0   ;;  %s2070_s22 = smov 0  }
  0x13   :  { %s2072_s23 = smov 0   ;;  %s2074_s24 = smov 0  }
  0x14   :  { %s2076_s25 = smov 0   ;;  %s2078_s26 = smov 0  }
  0x15 LB: > { %2445 = sst [smem:[#allocation24_spill]] %s1968_s21  ;;  %s2099_s27 = sadd.s32 4294967295, %s1988_s26   ;;  %s1988_s26 = sphi %s2078_s26, %s37_s26   ;;  %s1984_s25 = sphi %s2076_s25, %s2476_s25   ;;  %s1980_s24 = sphi %s2074_s24, %s2475_s24   ;;  %s1976_s23 = sphi %s2072_s23, %s2479_s23   ;;  %s1972_s22 = sphi %s2070_s22, %s2478_s22   ;;  %s1968_s21 = sphi %s2068_s21, %s2477_s21  }
  0x16   : > { %2446 = sst [smem:[#allocation25_spill]] %s1984_s25  ;;  %s1377_s28 = sadd.s32 4294967294, %s1988_s26  }
  0x17   : > { %2447 = sst [smem:[#allocation26_spill]] %s1988_s26  ;;  %p71_p0 = scmp.ne.s32.totalorder %s1972_s22, %s1968_s21 }
  0x18   : > { %p72_p1 = scmp.eq.s32.totalorder %s2099_s27, 0  ;;  %p317_p2 = scmp.eq.s32.totalorder %s2099_s27, 1 }
  0x19   : > { %p323_p3 = scmp.eq.s32.totalorder %s1377_s28, 1  ;;  %p1378_p5 = scmp.ge.s32.totalorder %s1988_s26, 1 }
  0x1a   : > { %p2108_p4 = por %p72_p1, %p71_p0  ;;  %p358_p7 = scmp.lt.s32.totalorder %s1988_s26, 3 }
  0x1b   : > { %p2113_p6 = por %p323_p3, %p71_p0  ;;  %s2451_s3 = sld [smem:[#allocation33_spill]] }
  0x1c   : > { %p2121_p8 = pnand %p1378_p5, %p358_p7  ;;  %s1990_s17 = smov [#allocation9]  }
  0x1d   : > { %s2449_s30 = scalar_select %p2113_p6, 1, 0 }
  0x1e   : > { %p1515_p9 = pneg %p2121_p8  ;;  %s371_s18 = sshll.u32 %s1990_s17, 4  ;;  %s372_s18 = int_to_ptr.vmem [resolvable:$true] %s371_s18 }
  0x1f   : > { %2450 = sst [smem:[#allocation27_spill]] %s2449_s30  ;;  %s2423_s14 = smov 64  }
  0x20   : > { %p2129_p10 = pnand %p1515_p9, %p72_p1  ;;  %s2454_s7 = sld [smem:[#allocation35_spill]] }
  0x21   : > { %s369_s15 = sshll.u32 %s2451_s3, 4  ;;  %s2425_s17 = smov 4   ;;  %s370_s15 = int_to_ptr.hbm [resolvable:$true] %s369_s15 }
  0x22   : > { %1518 = dma.hbm_to_vmem [thread:$0]  (!%p2129_p10), %s370_s15, 256, %s372_s18, [#allocation10], %s2423_s14, %s2423_s14, %s2425_s17  }
  0x23   : > { %s1993_s3 = smov [#allocation12]   ;;  %s49_s20 = sadd.s32 1, %s1984_s25 }
  0x24   : > { %s405_s30 = sshll.u32 %s1993_s3, 4  ;;  %s58_s28 = sadd.s32 1, %s1976_s23  ;;  %s406_s30 = int_to_ptr.vmem [resolvable:$true] %s405_s30 }
  0x25   : > { %p51_p12 = scmp.ge.s32.totalorder %s49_s20, 2  ;;  %p65_p13 = scmp.ne.s32.totalorder %s1976_s23, %s1972_s22 }
  0x26   : > { %s403_s13 = sshll.u32 %s2454_s7, 4  ;;  %p66_p0 = scmp.eq.s32.totalorder %s1988_s26, 0  ;;  %s404_s13 = int_to_ptr.hbm [resolvable:$true] %s403_s13 }
  0x27   : > { %1524 = dma.hbm_to_vmem [thread:$0]  (!%p2129_p10), %s404_s13, 256, %s406_s30, [#allocation13], %s2423_s14, %s2423_s14, %s2425_s17  }
  0x28   : > { %p1549_p3 = scmp.lt.s32.totalorder %s1988_s26, 2  ;;  %s2481_s20 = smov (%p51_p12, %s49_s20), 0 }
  0x29   : > { %2455 = sst [smem:[#allocation28_spill]] %s2481_s20  ;;  %p67_p5 = por %p66_p0, %p65_p13 }
  0x2a   : > { %p2157_p7 = por %p317_p2, %p65_p13  ;;  %s53_s15 = ssub.s32 %s1984_s25, %s2481_s20 }
  0x2b   : > { %s2430_s18 = sand.u32 1, %s1976_s23   ;;  %p56_p9 = scmp.eq.s32.totalorder %s53_s15, 0 }
  0x2c   : > { %s2456_s3 = scalar_select %p2157_p7, 1, 0 }
  0x2d   : > { %s2166_s30 = sshll.u32 %s2430_s18, 3  ;;  %s2169_s13 = sshll.u32 %s1984_s25, 3 }
  0x2e   : > { %2457 = sst [smem:[#allocation29_spill]] %s2456_s3  ;;  %p2171_p11 = pnand %p1549_p3, %p67_p5 }
  0x2f   : > { %s2176_s17 = scalar_select %p56_p9, %s1976_s23, %s58_s28  }
  0x30   : > { %s463_s7 = sand.u32 1, %s1988_s26   ;;  %s2460_s1 = sld [smem:[#allocation32_spill]] }
  0x31   : > { %2459 = sst [smem:[#allocation30_spill]] %s2176_s17  ;;  %s467_s20 = scalar_lea.vmem [#allocation6], %s2166_s30 }
  0x32   : > { %s475_s18 = sshll.u32 %s467_s20, 4  ;;  %s2461_s5 = sld [smem:[#allocation34_spill]]  ;;  %s476_s18 = int_to_ptr.vmem [resolvable:$true] %s475_s18 }
  0x33   : > { %s2187_s28 = scalar_lea.sflag [#allocation7], %s463_s7  ;;  %s2462_s17 = smov 4  }
  0x34   : > { %s2463_s26 = smov 64   ;;  %s1994_s12 = smov [#allocation11]  }
  0x35   : > { %s388_s21 = sshll.u32 %s1994_s12, 4  ;;  %s1995_s7 = smov [#allocation14]   ;;  %s389_s21 = int_to_ptr.vmem [resolvable:$true] %s388_s21 }
  0x36   : > { %s472_s15 = scalar_lea.hbm %s2460_s1, %s2169_s13  ;;  %s420_s1 = sshll.u32 %s2418_s9, 4  ;;  %s421_s1 = int_to_ptr.hbm [resolvable:$true] %s420_s1 }
  0x37   : > { %s473_s10 = sshll.u32 %s472_s15, 4  ;;  %s2464_s0 = sld [smem:[#allocation31_spill]]  ;;  %s474_s10 = int_to_ptr.hbm [resolvable:$true] %s473_s10 }
  0x38   : > { %s386_s3 = sshll.u32 %s2461_s5, 4  ;;  %s443_s20 = scalar_lea.vmem [#allocation3], %s2166_s30  ;;  %s387_s3 = int_to_ptr.hbm [resolvable:$true] %s386_s3 }
  0x39   : > { %1534 = dma.hbm_to_vmem [thread:$0]  (!%p2171_p11), %s474_s10, 128, %s476_s18, %s2187_s28, %s2463_s26, %s2463_s26, %s2462_s17  }
  0x3a   : > { %1521 = dma.hbm_to_vmem [thread:$0]  (!%p2129_p10), %s387_s3, 256, %s389_s21, [#allocation10], %s2463_s26, %s2463_s26, %s2462_s17  }
  0x3b   : > { %s422_s10 = sshll.u32 %s1995_s7, 4  ;;  %s453_s15 = sshll.u32 %s443_s20, 4  ;;  %s423_s10 = int_to_ptr.vmem [resolvable:$true] %s422_s10  ;;  %s454_s15 = int_to_ptr.vmem [resolvable:$true] %s453_s15 }
  0x3c   : > { %1527 = dma.hbm_to_vmem [thread:$0]  (!%p2129_p10), %s421_s1, 256, %s423_s10, [#allocation13], %s2463_s26, %s2463_s26, %s2462_s17  }
  0x3d   : > { %s450_s18 = scalar_lea.hbm %s2464_s0, %s2169_s13  ;;  %s2465_s3 = sand.u32 1, %s1976_s23  }
  0x3e   : > { %s451_s12 = sshll.u32 %s450_s18, 4  ;;  %s440_s21 = scalar_lea.sflag [#allocation4], %s2465_s3  ;;  %s452_s12 = int_to_ptr.hbm [resolvable:$true] %s451_s12 }
  0x3f   : > { %1531 = dma.hbm_to_vmem [thread:$0]  (!%p2171_p11), %s452_s12, 128, %s454_s15, %s440_s21, %s2463_s26, %s2463_s26, %s2462_s17  }
  0x40   : > { %s494_s19 = scalar_lea.hbm %s2411_s2, %s2169_s13  ;;  %s489_s0 = scalar_lea.vmem [#allocation8], %s2166_s30 }
  0x41   : > { %s495_s25 = sshll.u32 %s494_s19, 4  ;;  %s497_s5 = sshll.u32 %s489_s0, 4  ;;  %s496_s25 = int_to_ptr.hbm [resolvable:$true] %s495_s25  ;;  %s498_s5 = int_to_ptr.vmem [resolvable:$true] %s497_s5 }
  0x42   : > { %1537 = dma.hbm_to_vmem [thread:$0]  (!%p2171_p11), %s496_s25, 128, %s498_s5, %s2187_s28, %s2463_s26, %s2463_s26, %s2462_s17  }
  0x43   : > { %509 = sbr.rel (%p2121_p8) target bundleno = 1181 (0x49d), region = 64  ;;  %s2234_s1 = sand.u32 (!%p2121_p8), 1, %s1972_s22  }
  0x44   : > { %s2237_s13 = sshll.u32 (!%p2121_p8), %s2234_s1, 3  ;;  %s512_s0 = scalar_lea.sflag (!%p2121_p8), [#allocation4], %s2234_s1 }
  0x45   : > { %s515_s30 = scalar_lea.vmem (!%p2121_p8), [#allocation3], %s2237_s13 }
  0x48   : > { %1943 = dma.done.wait (%p2108_p4), %s512_s0, 128  }
  0x49   : > { %1945 = vsyncadd (%p2108_p4), %s512_s0, 4294967168  ;;  %s521_s5 = sand.u32 1, %s2099_s27   ;;  %s525_s16 = scalar_lea.vmem [#allocation6], %s2237_s13 }
  0x4a   : > { %s522_s26 = scalar_lea.sflag [#allocation7], %s521_s5 }
  0x4b   : > { %1947 = dma.done.wait (%p2108_p4), %s522_s26, 256  }
  0x4c   : > { %1949 = vsyncadd (%p2108_p4), %s522_s26, 4294967040  ;;  %s535_s14 = scalar_lea.vmem [#allocation8], %s2237_s13 }
  0x4d   : > { %1951 = dma.done.wait (%p72_p1), [#allocation10], 512  }
  0x4e   : > { %1953 = vsyncadd (%p72_p1), [#allocation10], 4294966784 }
  0x4f   : > { %1955 = dma.done.wait (%p72_p1), [#allocation13], 512  }
  0x50   : > { %1957 = vsyncadd (%p72_p1), [#allocation13], 4294966784  ;;  %v1478_v0 = vld [vmem:[#allocation9 + $0x8] sm:$0xff]  ;;  %v1481_v1 = vld [vmem:[#allocation11 + $0x8] sm:$0xff]  ;;  %vm643_vm0 = vcmask 261120   ;;  %vm765_vm1 = vcmask 64512  }
  0x51   : > { %v1477_v2 = vld [vmem:[#allocation9] sm:$0xff]  ;;  %653 = vmatpush.bf16.msra.mxu0 %v1478_v0  ;;  %697 = vmatpush.bf16.msra.mxu1 %v1481_v1  ;;  %v1480_v3 = vld [vmem:[#allocation11] sm:$0xff]  ;;  %s1996_s10 = smov 112   ;;  %s1997_s18 = smov 120   ;;  %vm788_vm2 = vcmask 130048   ;;  %v1484_v42 = vld [vmem:[#allocation12 + $0x8] sm:$0xff] }
  0x52   : > { %v1476_v4 = vld [vmem:[%s515_s30] sm:$0xff]  ;;  %v1479_v5 = vld [vmem:[%s525_s16] sm:$0xff]  ;;  %s1998_s12 = smov 104   ;;  %741 = vmatpush.bf16.msra.mxu2 %v1484_v42  ;;  %s1401_s3 = sshll.u32 %s2234_s1, 6  ;;  %vm919_vm3 = vcmask 130112   ;;  %vm1002_vm4 = vcmask 195712  }
  0x53   : > { %v1616_v6 = vld [vmem:[%s2413_s4] ss:$0 sm:$0xff]  ;;  %v1482_v44 = vld [vmem:[%s535_s14] sm:$0xff]  ;;  %s2312_s21 = scalar_lea.vmem [#allocation15], %s1401_s3  ;;  %s1999_s7 = smov 8   ;;  %vm1085_vm5 = vcmask 261312  }
  0x54   : > { %v1617_v9 = vld [vmem:[%s2415_s6] ss:$0 sm:$0xff]  ;;  %s2000_s11 = smov 24   ;;  %s2001_s19 = smov 16  }
  0x55   : > { %654 = vmatpush.bf16.msra.mxu0 %v1477_v2  ;;  %698 = vmatpush.bf16.msra.mxu1 %v1480_v3  ;;  %v1483_v43 = vld [vmem:[#allocation12] sm:$0xff]  ;;  %s1487_s13 = sshll.u32 %s1980_s24, 6  ;;  %s2467_s5 = sld [smem:[#allocation37_spill]] }
  0x56   : > { %742 = vmatpush.bf16.msra.mxu2 %v1483_v43  ;;  %s1150_s16 = sshll.u32 %s2312_s21, 4  ;;  %s1131_s29 = scalar_lea.sflag [#allocation5], %s2234_s1  ;;  %s1151_s16 = int_to_ptr.vmem [resolvable:$true] %s1150_s16 }
  0x58   : > { %1415 = vmatmul.msk.bf16.vlgmr.msra.gmra.mxu0 %vm643_vm0, %v1476_v4  ;;  %1428 = vmatmul.msk.bf16.vlgmr.msra.gmra.mxu1 %vm643_vm0, %v1479_v5 }
  0x59   : > { %1441 = vmatmul.msk.bf16.vlgmr.msra.gmra.mxu2 %vm643_vm0, %v1482_v44 }
  0x5b   : > { %s1149_s26 = scalar_lea.hbm %s2467_s5, %s1487_s13 }
  0x5c   : > { %s1152_s14 = sshll.u32 %s1149_s26, 4  ;;  %s1153_s14 = int_to_ptr.hbm [resolvable:$true] %s1152_s14 }
  0x5d   : > { %s1876_s17 = sshra.s32 %s1153_s14, 4  ;;  %s1877_s17 = int_to_ptr.hbm [resolvable:$true] %s1876_s17 }
  0x5e   : > { %s1878_s27 = scalar_lea.hbm %s1877_s17, 64  ;;  %p1883_p8 = scmp.lt.s32.totalorder %s1877_s17, %s2467_s5 }
  0x5f   : > { %p1879_p1 = scmp.ne.s32.totalorder %s1877_s17, %s1878_s27 }
  0x61   : > { %p1880_p2 = pnand %p1879_p1, %p2157_p7 }
  0x63   : > { %p1881_p4 = pneg %p1880_p2 }
  0xd5   : > { %v656_v7 = vpop.f32.mrf.mxu0  ;;  %v700_v8 = vpop.f32.mrf.mxu1 }
  0xd6   : > { %v657_v10 = vadd.f32 %v1616_v6, %v656_v7  ;;  %v701_v11 = vadd.f32 %v1617_v9, %v700_v8 }
  0xd8   : > { %v749_v12 = vpack.c.bf16 %v657_v10, %v657_v10  ;;  %v751_v15 = vpack.c.bf16 %v701_v11, %v701_v11  ;;  %v1618_v10 = vld [vmem:[%s2417_s8] ss:$0 sm:$0xff] }
  0xda   : > { %v757_v18 = vunpack.c.l.b16 %v749_v12  ;;  %v762_v21 = vunpack.c.l.b16 %v751_v15 }
  0xdd   : > { %v658_v13 = vpop.f32.mrf.mxu0  ;;  %v702_v14 = vpop.f32.mrf.mxu1 }
  0xde   : > { %v659_v16 = vadd.f32 %v1616_v6, %v658_v13  ;;  %v703_v17 = vadd.f32 %v1617_v9, %v702_v14  ;;  %v744_v9 = vpop.f32.mrf.mxu2 }
  0xdf   : > { %v745_v11 = vadd.f32 %v1618_v10, %v744_v9 }
  0xe0   : > { %v750_v19 = vpack.c.bf16 %v659_v16, %v659_v16  ;;  %v752_v20 = vpack.c.bf16 %v703_v17, %v703_v17 }
  0xe1   : > { %v753_v13 = vpack.c.bf16 %v745_v11, %v745_v11 }
  0xe2   : > { %v758_v22 = vunpack.c.l.b16 %v750_v19  ;;  %v763_v23 = vunpack.c.l.b16 %v752_v20 }
  0xe4   : > { %v759_v24 = vpack.c.b16 %v758_v22, %v757_v18  ;;  %v764_v25 = vpack.c.b16 %v763_v23, %v762_v21  ;;  %v816_v18 = vunpack.c.l.b16 %v753_v13 }
  0xe6   : > { %924 = vrot.lane.b32.xlu1 %v764_v25, %s1996_s10  ;;  %841 = vrot.lane.b32.xlu0 %v764_v25, %s1997_s18  ;;  %v770_v26 = vsel %vm765_vm1, %v764_v25, 0  ;;  %v746_v15 = vpop.f32.mrf.mxu2 }
  0xe7   : > { %922 = vrot.lane.b32.xlu2 %v759_v24, %s1996_s10  ;;  %779 = vmatpush.bf16.xpose.msra.mxu3 %v770_v26  ;;  %v747_v16 = vadd.f32 %v1618_v10, %v746_v15 }
  0xe9   : > { %v754_v19 = vpack.c.bf16 %v747_v16, %v747_v16 }
  0xeb   : > { %v817_v21 = vunpack.c.l.b16 %v754_v19 }
  0xee   : > { %1007 = vrot.lane.b32.xlu1 %v764_v25, %s1998_s12  ;;  %839 = vrot.lane.b32.xlu0 %v759_v24, %s1997_s18 }
  0xef   : > { %1005 = vrot.lane.b32.xlu2 %v759_v24, %s1998_s12  ;;  %1442 = vmatmul.msk.bf16.vlgmr.msra.gmra.mxu3 %vm765_vm1, %v759_v24  ;;  %v818_v24 = vpack.c.b16 %v817_v21, %v816_v18 }
  0xf1   : > { %830 = vmatpush.bf16.msrb.mxu0 %v818_v24 }
 0x141   : > { %v923_v31 = vpop.permute.xlu2 %922 }
 0x149   : > { %v1006_v35 = vpop.permute.xlu2 %1005 }
 0x158   : > { %v925_v27 = vpop.permute.xlu1 %924  ;;  %v842_v28 = vpop.permute.xlu0 %841 }
 0x159   : > { %v847_v29 = vsel %vm765_vm1, %v842_v28, 0  ;;  %v930_v30 = vsel %vm765_vm1, %v925_v27, 0 }
 0x15a   : > { %856 = vmatpush.bf16.xpose.msrb.mxu1 %v847_v29  ;;  %939 = vmatpush.bf16.xpose.msrb.mxu3 %v930_v30 }
 0x160   : > { %v1008_v32 = vpop.permute.xlu1 %1007  ;;  %v840_v33 = vpop.permute.xlu0 %839 }
 0x161   : > { %v1013_v34 = vsel %vm765_vm1, %v1008_v32, 0  ;;  %1444 = vmatmul.msk.bf16.vlgmr.msrb.gmra.mxu1 %vm765_vm1, %v840_v33  ;;  %1448 = vmatmul.msk.bf16.vlgmr.msrb.gmra.mxu3 %vm765_vm1, %v923_v31 }
 0x162   : > { %1022 = vmatpush.bf16.xpose.msra.mxu1 %v1013_v34 }
 0x171   : > { %1452 = vmatmul.msk.bf16.vlgmr.msra.gmra.mxu1 %vm765_vm1, %v1006_v35 }
 0x172   : > { %v781_v36 = vpop.f32.mrf.mxu3 }
 0x173   : > { %v786_v37 = vmul.f32 0.35355338, %v781_v36 }
 0x175   : > { %v789_v38 = vsel %vm788_vm2, %v786_v37, -inf }
 0x176   : > { %790 = vmax.xlane.f32.xlu2 %v789_v38 }
 0x17a   : > { %v783_v39 = vpop.f32.mrf.mxu3 }
 0x17b   : > { %v787_v40 = vmul.f32 0.35355338, %v783_v39 }
 0x17d   : > { %v792_v41 = vsel %vm788_vm2, %v787_v40, -inf }
 0x17e   : > { %793 = vmax.xlane.f32.xlu2 %v792_v41 }
 0x1de   : > { %v858_v45 = vpop.f32.mrf.mxu1 }
 0x1df   : > { %v863_v46 = vmul.f32 0.35355338, %v858_v45 }
 0x1e1   : > { %v865_v47 = vsel %vm788_vm2, %v863_v46, -inf }
 0x1e2   : > { %866 = vmax.xlane.f32.xlu0 %v865_v47 }
 0x1e4   : > { %v941_v48 = vpop.f32.mrf.mxu3 }
 0x1e5   : > { %v946_v49 = vmul.f32 0.35355338, %v941_v48 }
 0x1e6   : > { %v860_v50 = vpop.f32.mrf.mxu1 }
 0x1e7   : > { %v864_v51 = vmul.f32 0.35355338, %v860_v50  ;;  %v948_v52 = vsel %vm788_vm2, %v946_v49, -inf }
 0x1e8   : > { %949 = vmax.xlane.f32.xlu2 %v948_v52 }
 0x1e9   : > { %v791_v53 = vpop.xlane.xlu2 %790  ;;  %v868_v54 = vsel %vm788_vm2, %v864_v51, -inf }
 0x1ea   : > { %869 = vmax.xlane.f32.xlu1 %v868_v54  ;;  %v795_v57 = vsub.f32 %v786_v37, %v791_v53 }
 0x1ec   : > { %v943_v55 = vpop.f32.mrf.mxu3  ;;  %v797_v61 = vmul.f32 1.442695, %v795_v57 }
 0x1ed   : > { %v947_v56 = vmul.f32 0.35355338, %v943_v55 }
 0x1ee   : > { %v1024_v58 = vpop.f32.mrf.mxu1  ;;  %1620 = vpow2.f32 %v797_v61 }
 0x1ef   : > { %v951_v59 = vsel %vm788_vm2, %v947_v56, -inf  ;;  %v1029_v63 = vmul.f32 0.35355338, %v1024_v58 }
 0x1f0   : > { %952 = vmax.xlane.f32.xlu0 %v951_v59 }
 0x1f1   : > { %v794_v60 = vpop.xlane.xlu2 %793  ;;  %v1031_v3 = vsel %vm788_vm2, %v1029_v63, -inf }
 0x1f2   : > { %v796_v62 = vsub.f32 %v787_v40, %v794_v60 }
 0x1f4   : > { %v799_v0 = vmul.f32 1.442695, %v796_v62  ;;  %v2293_v5 = vpop.eup %1620 }
 0x1f5   : > { %v801_v7 = vsel %vm788_vm2, %v2293_v5, 0.0 }
 0x1f6   : > { %v1026_v1 = vpop.f32.mrf.mxu1  ;;  %1622 = vpow2.f32 %v799_v0 }
 0x1f7   : > { %v1030_v2 = vmul.f32 0.35355338, %v1026_v1 }
 0x1f8   : > { %1032 = vmax.xlane.f32.xlu0 %v1031_v3 }
 0x1f9   : > { %v1034_v4 = vsel %vm788_vm2, %v1030_v2, -inf }
 0x1fa   : > { %1035 = vmax.xlane.f32.xlu1 %v1034_v4 }
 0x1fc   : > { %v2295_v6 = vpop.eup %1622 }
 0x1fd   : > { %v804_v8 = vsel %vm788_vm2, %v2295_v6, 0.0 }
 0x200   : > { %802 = vadd.xlane.f32.xlu0 %v801_v7 }
 0x202   : > { %805 = vadd.xlane.f32.xlu1 %v804_v8 }
 0x255   : > { %v867_v12 = vpop.xlane.xlu0 %866 }
 0x256   : > { %v871_v14 = vsub.f32 %v863_v46, %v867_v12 }
 0x258   : > { %v873_v17 = vmul.f32 1.442695, %v871_v14 }
 0x25a   : > { %1624 = vpow2.f32 %v873_v17 }
 0x25b   : > { %v950_v20 = vpop.xlane.xlu2 %949 }
 0x25c   : > { %v954_v22 = vsub.f32 %v946_v49, %v950_v20 }
 0x25d   : > { %v870_v23 = vpop.xlane.xlu1 %869 }
 0x25e   : > { %v956_v25 = vmul.f32 1.442695, %v954_v22  ;;  %v872_v26 = vsub.f32 %v864_v51, %v870_v23 }
 0x260   : > { %v1625_v27 = vpop.eup %1624  ;;  %1626 = vpow2.f32 %v956_v25  ;;  %v875_v28 = vmul.f32 1.442695, %v872_v26  ;;  %v1486_v26 = vld [vmem:[#allocation14 + $0x8] sm:$0xff] }
 0x261   : > { %v877_v29 = vsel %vm788_vm2, %v1625_v27, 0.0  ;;  %1120 = vmatpush.bf16.msra.mxu3 %v1486_v26 }
 0x262   : > { %1628 = vpow2.f32 %v875_v28  ;;  %878 = vadd.xlane.f32.xlu1 %v877_v29 }
 0x263   : > { %v953_v30 = vpop.xlane.xlu0 %952 }
 0x264   : > { %v955_v31 = vsub.f32 %v947_v56, %v953_v30 }
 0x266   : > { %v1627_v32 = vpop.eup %1626  ;;  %v958_v33 = vmul.f32 1.442695, %v955_v31 }
 0x267   : > { %v960_v34 = vsel %vm788_vm2, %v1627_v32, 0.0 }
 0x268   : > { %v1629_v35 = vpop.eup %1628  ;;  %1630 = vpow2.f32 %v958_v33  ;;  %961 = vadd.xlane.f32.xlu0 %v960_v34 }
 0x269   : > { %v880_v36 = vsel %vm788_vm2, %v1629_v35, 0.0 }
 0x26a   : > { %881 = vadd.xlane.f32.xlu2 %v880_v36 }
 0x26b   : > { %v1033_v37 = vpop.xlane.xlu0 %1032 }
 0x26c   : > { %v1037_v38 = vsub.f32 %v1029_v63, %v1033_v37 }
 0x26d   : > { %v1036_v39 = vpop.xlane.xlu1 %1035 }
 0x26e   : > { %v1631_v40 = vpop.eup %1630  ;;  %v1039_v41 = vmul.f32 1.442695, %v1037_v38  ;;  %v1038_v42 = vsub.f32 %v1030_v2, %v1036_v39 }
 0x26f   : > { %v963_v43 = vsel %vm788_vm2, %v1631_v40, 0.0 }
 0x270   : > { %1632 = vpow2.f32 %v1039_v41  ;;  %v1041_v44 = vmul.f32 1.442695, %v1038_v42  ;;  %964 = vadd.xlane.f32.xlu1 %v963_v43 }
 0x272   : > { %1634 = vpow2.f32 %v1041_v44 }
 0x273   : > { %v803_v45 = vpop.xlane.xlu0 %802 }
 0x274   : > { %1636 = vrcp.f32 %v803_v45 }
 0x275   : > { %v806_v46 = vpop.xlane.xlu1 %805 }
 0x276   : > { %v1633_v47 = vpop.eup %1632  ;;  %1638 = vrcp.f32 %v806_v46 }
 0x277   : > { %v1043_v48 = vsel %vm788_vm2, %v1633_v47, 0.0 }
 0x278   : > { %v1635_v49 = vpop.eup %1634  ;;  %1044 = vadd.xlane.f32.xlu0 %v1043_v48 }
 0x279   : > { %v1046_v50 = vsel %vm788_vm2, %v1635_v49, 0.0 }
 0x27a   : > { %v1637_v51 = vpop.eup %1636  ;;  %1047 = vadd.xlane.f32.xlu1 %v1046_v50 }
 0x27b   : > { %v809_v52 = vmul.f32 %v1637_v51, %v2293_v5 }
 0x27c   : > { %v1639_v53 = vpop.eup %1638 }
 0x27d   : > { %811 = vst.msk [vmem:[%s2312_s21] sm:$0xff] %vm788_vm2, %v809_v52  ;;  %v810_v54 = vmul.f32 %v1639_v53, %v2295_v6 }
 0x27f   : > { %812 = vst.msk [vmem:[%s2312_s21 + $0x8] sm:$0xff] %vm788_vm2, %v810_v54  ;;  %v813_v55 = vpack.c.bf16 %v810_v54, %v809_v52 }
 0x281   : > { %1443 = vmatmul.msk.bf16.vlgmr.msrb.gmra.mxu0 %vm788_vm2, %v813_v55 }
 0x282   : > { %891 = vrot.lane.b32.xlu2 %v818_v24, %s1997_s18  ;;  %s1882_s18 = scalar_lea.hbm %s2467_s5, 128 }
 0x283   : > { %p1884_p10 = scmp.lt.s32.totalorder %s1882_s18, %s1878_s27 }
 0x285   : > { %p1885_p11 = por %p1884_p10, %p1883_p8 }
 0x287   : > { %p1886_p12 = pnand %p1885_p11, %p1881_p4 }
 0x28c   : > { %1057 = vrot.lane.b32.xlu0 %v818_v24, %s1998_s12 }
 0x293   : > { %974 = vrot.lane.b32.xlu1 %v818_v24, %s1996_s10 }
 0x2d5   : > { %v879_v56 = vpop.xlane.xlu1 %878 }
 0x2d6   : > { %1640 = vrcp.f32 %v879_v56 }
 0x2db   : > { %v962_v57 = vpop.xlane.xlu0 %961 }
 0x2dc   : > { %v1641_v58 = vpop.eup %1640  ;;  %1642 = vrcp.f32 %v962_v57 }
 0x2dd   : > { %v885_v59 = vmul.f32 %v1641_v58, %v1625_v27  ;;  %v882_v60 = vpop.xlane.xlu2 %881  ;;  %v1485_v27 = vld [vmem:[#allocation14] sm:$0xff] }
 0x2de   : > { %1644 = vrcp.f32 %v882_v60  ;;  %1121 = vmatpush.bf16.msra.mxu3 %v1485_v27 }
 0x2df   : > { %1445 = vst.msk [vmem:[%s2312_s21 + $0x10] sm:$0xff] %vm788_vm2, %v885_v59 }
 0x2e2   : > { %v1643_v61 = vpop.eup %1642 }
 0x2e3   : > { %v968_v62 = vmul.f32 %v1643_v61, %v1627_v32  ;;  %v965_v63 = vpop.xlane.xlu1 %964 }
 0x2e4   : > { %v1645_v0 = vpop.eup %1644  ;;  %1646 = vrcp.f32 %v965_v63 }
 0x2e5   : > { %1449 = vst.msk [vmem:[%s2312_s21 + $0x20] sm:$0xff] %vm788_vm2, %v968_v62  ;;  %v886_v1 = vmul.f32 %v1645_v0, %v1629_v35  ;;  %v892_v2 = vpop.permute.xlu2 %891 }
 0x2e6   : > { %904 = vmatpush.bf16.msrb.mxu2 %v892_v2 }
 0x2e7   : > { %1446 = vst.msk [vmem:[%s2312_s21 + $0x18] sm:$0xff] %vm788_vm2, %v886_v1  ;;  %v890_v3 = vpack.c.bf16 %v886_v1, %v885_v59 }
 0x2e9   : > { %1447 = vmatmul.msk.bf16.vlgmr.msrb.gmra.mxu2 %vm788_vm2, %v890_v3 }
 0x2ea   : > { %v1647_v4 = vpop.eup %1646 }
 0x2eb   : > { %v969_v5 = vmul.f32 %v1647_v4, %v1631_v40  ;;  %v1045_v6 = vpop.xlane.xlu0 %1044 }
 0x2ec   : > { %1648 = vrcp.f32 %v1045_v6 }
 0x2ed   : > { %1450 = vst.msk [vmem:[%s2312_s21 + $0x28] sm:$0xff] %vm788_vm2, %v969_v5  ;;  %v1048_v7 = vpop.xlane.xlu1 %1047  ;;  %v973_v17 = vpack.c.bf16 %v969_v5, %v968_v62 }
 0x2ee   : > { %1650 = vrcp.f32 %v1048_v7 }
 0x2f2   : > { %v1649_v8 = vpop.eup %1648 }
 0x2f3   : > { %v1051_v9 = vmul.f32 %v1649_v8, %v1633_v47 }
 0x2f4   : > { %v1651_v10 = vpop.eup %1650 }
 0x2f5   : > { %1453 = vst.msk [vmem:[%s2312_s21 + $0x30] sm:$0xff] %vm788_vm2, %v1051_v9  ;;  %v1052_v11 = vmul.f32 %v1651_v10, %v1635_v49 }
 0x2f7   : > { %1454 = vst.msk [vmem:[%s2312_s21 + $0x38] sm:$0xff] %vm788_vm2, %v1052_v11  ;;  %v1056_v14 = vpack.c.bf16 %v1052_v11, %v1051_v9 }
 0x2fe   : > { %v832_v12 = vpop.f32.mrf.mxu0  ;;  %v1058_v13 = vpop.permute.xlu0 %1057 }
 0x2ff   : > { %837 = vst.msk [vmem:[#allocation2] sm:$0xff] %vm765_vm1, %v832_v12  ;;  %1070 = vmatpush.bf16.msra.mxu2 %v1058_v13 }
 0x302   : > { %1455 = vmatmul.msk.bf16.vlgmr.msra.gmra.mxu2 %vm788_vm2, %v1056_v14 }
 0x305   : > { %v975_v15 = vpop.permute.xlu1 %974 }
 0x306   : > { %v834_v16 = vpop.f32.mrf.mxu0  ;;  %987 = vmatpush.bf16.msra.mxu0 %v975_v15 }
 0x307   : > { %838 = vst.msk [vmem:[#allocation2 + $0x8] sm:$0xff] %vm765_vm1, %v834_v16 }
 0x309   : > { %1451 = vmatmul.msk.bf16.vlgmr.msra.gmra.mxu0 %vm788_vm2, %v973_v17 }
 0x36c   : > { %v906_v18 = vpop.f32.mrf.mxu2 }
 0x36d   : > { %913 = vrot.lane.b32.xlu2 %v906_v18, %s1999_s7 }
 0x374   : > { %v908_v19 = vpop.f32.mrf.mxu2 }
 0x375   : > { %915 = vrot.lane.b32.xlu2 %v908_v19, %s1999_s7 }
 0x385   : > { %v1072_v20 = vpop.f32.mrf.mxu2 }
 0x386   : > { %v989_v21 = vpop.f32.mrf.mxu0  ;;  %1079 = vrot.lane.b32.xlu1 %v1072_v20, %s2000_s11 }
 0x387   : > { %996 = vrot.lane.b32.xlu0 %v989_v21, %s2001_s19 }
 0x38d   : > { %v1074_v22 = vpop.f32.mrf.mxu2 }
 0x38e   : > { %v991_v23 = vpop.f32.mrf.mxu0 }
 0x38f   : > { %998 = vrot.lane.b32.xlu2 %v991_v23, %s2001_s19  ;;  %1081 = vrot.lane.b32.xlu0 %v1074_v22, %s2000_s11 }
 0x3c7   : > { %v914_v24 = vpop.permute.xlu2 %913 }
 0x3c8   : > { %920 = vst.msk [vmem:[#allocation2] sm:$0xff] %vm919_vm3, %v914_v24 }
 0x3cf   : > { %v916_v25 = vpop.permute.xlu2 %915 }
 0x3d0   : > { %921 = vst.msk [vmem:[#allocation2 + $0x8] sm:$0xff] %vm919_vm3, %v916_v25 }
 0x3e9   : > { %v999_v28 = vpop.permute.xlu2 %998 }
 0x3ea   : > { %1004 = vst.msk [vmem:[#allocation2 + $0x8] sm:$0xff] %vm1002_vm4, %v999_v28 }
 0x3f8   : > { %v1080_v30 = vpop.permute.xlu1 %1079 }
 0x3f9   : > { %v997_v29 = vpop.permute.xlu0 %996 }
 0x3fa   : > { %1003 = vst.msk [vmem:[#allocation2] sm:$0xff] %vm1002_vm4, %v997_v29 }
 0x3fb   : > { %1086 = vst.msk [vmem:[#allocation2] sm:$0xff] %vm1085_vm5, %v1080_v30 }
 0x401   : > { %v1082_v31 = vpop.permute.xlu0 %1081 }
 0x402   : > { %1087 = vst.msk [vmem:[#allocation2 + $0x8] sm:$0xff] %vm1085_vm5, %v1082_v31  ;;  %v1088_v32 = vld [vmem:[#allocation2] sm:$0xff] }
 0x409   : > { %v1089_v33 = vld [vmem:[#allocation2 + $0x8] sm:$0xff] }
 0x40a   : > { %v1090_v34 = vpack.c.bf16 %v1089_v33, %v1088_v32 }
 0x40c   : > { %1464 = vmatmul.msk.bf16.vlgmr.msra.gmra.mxu3 %vm643_vm0, %v1090_v34 }
 0x40d   : > { %1889 = shalt.err (!%p1886_p12)
}
 0x40e   : > { %s2002_s15 = smov 128   ;;  %s1402_s3 = sshll.u32 %s2234_s1, 4 }
 0x40f   : > { %1511 = dma.vmem_to_hbm [thread:$0]  (%p2157_p7), %s1151_s16, 1024, %s1153_s14, %s1131_s29, %s2002_s15, %s2002_s15, %s1999_s7  }
 0x410   : > { %s2468_s19 = sld [smem:[#allocation36_spill]]  ;;  %s1488_s13 = sshll.u32 %s1980_s24, 4 }
 0x411   : > { %s611_s0 = scalar_lea.vmem [#allocation16], %s1402_s3  ;;  %s2469_s17 = sld [smem:[#allocation38_spill]] }
 0x412   : > { %s1169_s28 = sshll.u32 %s611_s0, 4  ;;  %s1136_s16 = scalar_lea.sflag [#allocation17], %s2234_s1  ;;  %s1170_s28 = int_to_ptr.vmem [resolvable:$true] %s1169_s28 }
 0x416   : > { %v1619_v35 = vld [vmem:[%s2468_s19] ss:$0 sm:$0xff] }
 0x417   : > { %s1168_s27 = scalar_lea.hbm %s2469_s17, %s1488_s13  ;;  %s1910_s12 = scalar_lea.hbm %s2469_s17, 32 }
 0x418   : > { %s1171_s10 = sshll.u32 %s1168_s27, 4  ;;  %s1172_s10 = int_to_ptr.hbm [resolvable:$true] %s1171_s10 }
 0x419   : > { %s1904_s14 = sshra.s32 %s1172_s10, 4  ;;  %s1905_s14 = int_to_ptr.hbm [resolvable:$true] %s1904_s14 }
 0x41a   : > { %s1906_s24 = scalar_lea.hbm %s1905_s14, 16  ;;  %p1911_p5 = scmp.lt.s32.totalorder %s1905_s14, %s2469_s17 }
 0x41b   : > { %p1907_p13 = scmp.ne.s32.totalorder %s1905_s14, %s1906_s24  ;;  %p1912_p9 = scmp.lt.s32.totalorder %s1910_s12, %s1906_s24 }
 0x41d   : > { %p1908_p0 = pnand %p1907_p13, %p2157_p7  ;;  %p1913_p1 = por %p1912_p9, %p1911_p5 }
 0x41f   : > { %p1909_p3 = pneg %p1908_p0 }
 0x421   : > { %p1914_p2 = pnand %p1913_p1, %p1909_p3 }
 0x48f   : > { %v1123_v36 = vpop.f32.mrf.mxu3 }
 0x490   : > { %v1124_v37 = vadd.f32 %v1619_v35, %v1123_v36 }
 0x492   : > { %1128 = vst.msk [vmem:[%s611_s0] sm:$0xff] %vm643_vm0, %v1124_v37 }
 0x497   : > { %v1125_v38 = vpop.f32.mrf.mxu3 }
 0x498   : > { %v1126_v39 = vadd.f32 %v1619_v35, %v1125_v38 }
 0x49a   : > { %1129 = vst.msk [vmem:[%s611_s0 + $0x8] sm:$0xff] %vm643_vm0, %v1126_v39 }
 0x49b   : > { %1917 = shalt.err (!%p1914_p2)
}
 0x49c   : > { %1512 = dma.vmem_to_hbm [thread:$0]  (%p2157_p7), %s1170_s28, 256, %s1172_s10, %s1136_s16, %s2002_s15, %s2002_s15, %s1999_s7  }
 0x49d PF: > { %s2470_s1 = sld [smem:[#allocation24_spill]] }
 0x49e   : > { %s2472_s11 = sld [smem:[#allocation26_spill]] }
 0x4a3   : > { %s1186_s19 = sand.u32 1, %s2470_s1  }
 0x4a4   : > { %p2473_p4 = scmp.ge.s32.totalorder %s2472_s11, 2  ;;  %s1187_s13 = scalar_lea.sflag [#allocation5], %s1186_s19 }
 0x4a6   : > { %p1539_p8 = pnand %p2473_p4, %p2113_p6 }
 0x4a8   : > { %p1540_p10 = pneg %p1539_p8 }
 0x4aa   : > { %1959 = dma.done.wait (%p1540_p10), %s1187_s13, 1024  }
 0x4ab   : > { %1961 = vsyncadd (%p1540_p10), %s1187_s13, 4294966272  ;;  %s1197_s0 = scalar_lea.sflag [#allocation17], %s1186_s19 }
 0x4ac   : > { %1963 = dma.done.wait (%p1540_p10), %s1197_s0, 256  }
 0x4ad   : > { %1965 = vsyncadd (%p1540_p10), %s1197_s0, 4294967040  ;;  %s37_s26 = sadd.s32 1, %s2472_s11   ;;  %s2474_s7 = sld [smem:[#allocation30_spill]] }
 0x4ae   : > { %p34_p11 = scmp.ge.s32.totalorder %s37_s26, 4   ;;  %s2475_s24 = sld [smem:[#allocation25_spill]] }
 0x4af   : > { %s2476_s25 = sld [smem:[#allocation28_spill]]  ;;  %s2477_s21 = smov %s1972_s22 }
 0x4b0   : > { %s2478_s22 = smov %s1976_s23  ;;  %36 = sbr.rel (!%p34_p11) target bundleno = 21 (0x15), region = 169 }
 0x4b3   : > { %s2479_s23 = smov %s2474_s7 }
 0x4b5   :  { %1203 = vsyncpa [#allocation4], 1 }
 0x4b6   :  { %1205 = vsyncpa [#allocation4 + $0x1], 1 }
 0x4b7   :  { %1206 = vsyncpa [#allocation7], 1 }
 0x4b8   :  { %1208 = vsyncpa [#allocation7 + $0x1], 1 }
 0x4b9   :  { %1209 = vsyncpa [#allocation10], 1 }
 0x4ba   :  { %1210 = vsyncpa [#allocation13], 1 }
 0x4bb   :  { %1211 = vsyncpa [#allocation5], 1 }
 0x4bc   :  { %1213 = vsyncpa [#allocation5 + $0x1], 1 }
 0x4bd   :  { %1214 = vsyncpa [#allocation17], 1 }
 0x4be   :  { %1216 = vsyncpa [#allocation17 + $0x1], 1 }

</bundles_post_ra>
